<compile_context>
chip_gen: v7x
topology: tpu7x:2x2x1
jax: 0.10.0
libtpu: 0.0.40
codegen_flags: <defaults>
</compile_context>

<pallas_src>
import functools

import jax
import jax.numpy as jnp
from jax import lax
from jax.experimental import pallas as pl
from jax.experimental.pallas import tpu as pltpu


def _critic_kernel(v_ref, coords_ref, ts_ref, o_ref, *, width):
    """One grid step gathers one batch-chunk of pixel values.

    v_ref:      VMEM [Bc, H*W] f32  (flattened images for this chunk)
    coords_ref: VMEM [Bc, 2]   i32  (col 0 = x -> W axis, col 1 = y -> H axis)
    ts_ref:     SMEM [1, 1]    f32  (time_scale)
    o_ref:      VMEM [Bc, 1]   f32  (gathered values * time_scale)
    """
    bc, hw = v_ref.shape

    xs = coords_ref[:, 0:1]                                   # (Bc, 1)
    ys = coords_ref[:, 1:2]                                   # (Bc, 1)
    flat_idx = ys * width + xs                                # (Bc, 1) = y*W + x

    # Lane iota over the flattened pixel axis; (Bc,1) broadcasts along lanes
    # only, so no cross-layout relayout of the per-batch coordinates is needed.
    pix_ids = lax.broadcasted_iota(jnp.int32, (bc, hw), 1)
    picked = jnp.sum(
        jnp.where(pix_ids == flat_idx, v_ref[...], 0.0),
        axis=1, keepdims=True)                                # (Bc, 1)

    # Apply time_scale once, vectorized over the whole chunk.
    o_ref[...] = picked * ts_ref[0, 0]


def critic_forward(v_image, actor_pixel_selection, time_scale):
    """v_image: [B, H, W]; actor_pixel_selection: [B, 2] (int or float)."""
    B, H, W = v_image.shape
    HW = H * W

    v_flat = v_image.astype(jnp.float32).reshape(B, HW)       # free reshape
    coords = actor_pixel_selection.astype(jnp.int32)          # matches .long()

    # TODO(synk): PyTorch's host-side bounds asserts have no in-kernel
    # equivalent; coords are clamped instead, so out-of-range selections map to
    # edge pixels rather than failing.
    coords = jnp.stack(
        [jnp.clip(coords[:, 0], 0, W - 1),
         jnp.clip(coords[:, 1], 0, H - 1)],
        axis=1,
    )

    ts = jnp.asarray(time_scale, dtype=jnp.float32).reshape(1, 1)

    # Batch-chunk size: as many whole images per grid step as comfortably fit
    # double-buffered in a few MiB of VMEM, capped at 128 rows, multiple of 8.
    bytes_per_image = HW * 4
    rows_by_vmem = max(8, (8 * 1024 * 1024) // (2 * bytes_per_image))
    bc = max(8, (min(128, rows_by_vmem) // 8) * 8)
    if B <= bc:
        bc = B  # single block exactly covering the batch dim (no padding games)

    grid = (pl.cdiv(B, bc),)
    kernel = functools.partial(_critic_kernel, width=W)

    out = pl.pallas_call(
        kernel,
        out_shape=jax.ShapeDtypeStruct((B, 1), jnp.float32),
        grid_spec=pltpu.PrefetchScalarGridSpec(
            num_scalar_prefetch=0,
            grid=grid,
            in_specs=[
                # One contiguous DMA of a whole chunk of flattened images.
                pl.BlockSpec((bc, HW), lambda i: (i, 0)),
                # Matching chunk of coordinates.
                pl.BlockSpec((bc, 2), lambda i: (i, 0)),
                # time_scale: whole (1,1) array in SMEM, no per-step DMA.
                pl.BlockSpec(memory_space=pltpu.MemorySpace.SMEM),
            ],
            # Each grid step owns its own output block -> no resident
            # accumulator, so the grid axis can be parallel (v7x: 2 TCs).
            out_specs=pl.BlockSpec((bc, 1), lambda i: (i, 0)),
        ),
        compiler_params=pltpu.CompilerParams(
            dimension_semantics=("parallel",),
        ),
    )(v_flat, coords, ts)

    return out.reshape(B, 1, 1)


def _reference(v_image, coords, time_scale):
    B = v_image.shape[0]
    return (v_image[jnp.arange(B), coords[:, 1], coords[:, 0]]
            * time_scale).reshape(B, 1, 1)


if __name__ == "__main__":
    # FLAGS.time_scale (only attribute of the module used by forward)
    TIME_SCALE = 10.0

    # --- Test 1: small shape matching the module's typical use ---
    B, H, W = 2, 16, 16
    key = jax.random.PRNGKey(0)
    k_img, k_x, k_y, k2_img, k2_x, k2_y = jax.random.split(key, 6)

    v_image = jax.random.normal(k_img, (B, H, W), dtype=jnp.float32)
    x_coords = jax.random.randint(k_x, (B,), 0, W, dtype=jnp.int32)
    y_coords = jax.random.randint(k_y, (B,), 0, H, dtype=jnp.int32)
    sel = jnp.stack([x_coords, y_coords], axis=1)              # [B, 2]

    out = critic_forward(v_image, sel, TIME_SCALE)
    out = jax.block_until_ready(out)
    ref = _reference(v_image, sel, TIME_SCALE)
    assert out.shape == (B, 1, 1), out.shape
    assert jnp.allclose(out, ref, atol=1e-6), (out, ref)

    # --- Test 2: larger batch -> multi-chunk grid with a ragged last block ---
    B2, H2, W2 = 300, 12, 12
    v_image2 = jax.random.normal(k2_img, (B2, H2, W2), dtype=jnp.float32)
    x2 = jax.random.randint(k2_x, (B2,), 0, W2, dtype=jnp.int32)
    y2 = jax.random.randint(k2_y, (B2,), 0, H2, dtype=jnp.int32)
    sel2 = jnp.stack([x2, y2], axis=1)

    out2 = critic_forward(v_image2, sel2, TIME_SCALE)
    out2 = jax.block_until_ready(out2)
    ref2 = _reference(v_image2, sel2, TIME_SCALE)
    assert out2.shape == (B2, 1, 1), out2.shape
    assert jnp.allclose(out2, ref2, atol=1e-6)

    print("KERNEL_OK")
</pallas_src>

<mosaic_0001>
module attributes {stable_mosaic.version = 11 : i64} {
  func.func @_critic_kernel(%arg0: i32, %arg1: memref<2x256xf32, #tpu.memory_space<vmem>>, %arg2: memref<2x2xi32, #tpu.memory_space<vmem>>, %arg3: memref<1x1xf32, #tpu.memory_space<smem>>, %arg4: memref<2x1xf32, #tpu.memory_space<vmem>>) attributes {dimension_semantics = [#tpu.dimension_semantics<parallel>], iteration_bounds = array<i64: 1>, scalar_prefetch = 0 : i64, scratch_operands = 0 : i64, tpu.core_type = #tpu.core_type<tc>, window_params = [{transform_indices = @transform_0, window_bounds = array<i64: 2, 256>}, {transform_indices = @transform_1, window_bounds = array<i64: 2, 2>}, {transform_indices = @transform_2, window_bounds = array<i64: 1, 1>}, {transform_indices = @transform_3, window_bounds = array<i64: 2, 1>}]} {
    %c0 = arith.constant 0 : index
    %c0_0 = arith.constant 0 : index
    %0 = vector.load %arg2[%c0, %c0_0] : memref<2x2xi32, #tpu.memory_space<vmem>>, vector<2x1xi32>
    %c0_1 = arith.constant 0 : index
    %c1 = arith.constant 1 : index
    %1 = vector.load %arg2[%c0_1, %c1] : memref<2x2xi32, #tpu.memory_space<vmem>>, vector<2x1xi32>
    %c16_i32 = arith.constant 16 : i32
    %2 = vector.broadcast %c16_i32 : i32 to vector<2x1xi32>
    %3 = arith.muli %1, %2 : vector<2x1xi32>
    %4 = arith.addi %3, %0 : vector<2x1xi32>
    %5 = tpu.iota {dimensions = array<i32: 1>} : vector<2x256xi32>
    %6 = vector.broadcast %4 : vector<2x1xi32> to vector<2x256xi32>
    %7 = arith.cmpi eq, %5, %6 : vector<2x256xi32>
    %c0_2 = arith.constant 0 : index
    %c0_3 = arith.constant 0 : index
    %8 = vector.load %arg1[%c0_2, %c0_3] : memref<2x256xf32, #tpu.memory_space<vmem>>, vector<2x256xf32>
    %cst = arith.constant 0.000000e+00 : f32
    %9 = vector.broadcast %cst : f32 to vector<2x256xf32>
    %10 = arith.select %7, %8, %9 : vector<2x256xi1>, vector<2x256xf32>
    %cst_4 = arith.constant dense<0.000000e+00> : vector<2xf32>
    %11 = vector.multi_reduction <add>, %10, %cst_4 [1] : vector<2x256xf32> to vector<2xf32>
    %12 = vector.shape_cast %11 : vector<2xf32> to vector<2x1xf32>
    %c0_5 = arith.constant 0 : index
    %c0_6 = arith.constant 0 : index
    %13 = memref.load %arg3[%c0_5, %c0_6] : memref<1x1xf32, #tpu.memory_space<smem>>
    %14 = vector.broadcast %13 : f32 to vector<2x1xf32>
    %15 = arith.mulf %12, %14 : vector<2x1xf32>
    %c0_7 = arith.constant 0 : index
    %c0_8 = arith.constant 0 : index
    %16 = vector.load %arg4[%c0_7, %c0_8] : memref<2x1xf32, #tpu.memory_space<vmem>>, vector<2x1xf32>
    tpu.vector_store %arg4[%c0_7, %c0_8], %15 {strides = array<i32>} : memref<2x1xf32, #tpu.memory_space<vmem>>, vector<2x1xf32>,
    return
  }
  func.func @transform_0(%arg0: i32) -> (i32, i32) {
    %c0_i32 = arith.constant 0 : i32
    %c0_i32_0 = arith.constant 0 : i32
    return %arg0, %c0_i32 : i32, i32
  }
  func.func @transform_1(%arg0: i32) -> (i32, i32) {
    %c0_i32 = arith.constant 0 : i32
    %c0_i32_0 = arith.constant 0 : i32
    return %arg0, %c0_i32 : i32, i32
  }
  func.func @transform_2(%arg0: i32) -> (i32, i32) {
    %c0_i32 = arith.constant 0 : i32
    %c0_i32_0 = arith.constant 0 : i32
    %c0_i32_1 = arith.constant 0 : i32
    return %c0_i32, %c0_i32_0 : i32, i32
  }
  func.func @transform_3(%arg0: i32) -> (i32, i32) {
    %c0_i32 = arith.constant 0 : i32
    %c0_i32_0 = arith.constant 0 : i32
    return %arg0, %c0_i32 : i32, i32
  }
}

</mosaic_0001>

<bundles_post_ra>
// kernel: tpu_custom_call.1
= control target key start
LH: loop header
LB: loop body
LE: loop exit
PB: predicated region body
PF: predicated region fallthrough
CT: control target
= control target key end

     0   :  { %9 = vsyncpa [#allocation4], 0  ;;  %s99_s12 = smov [#allocation3]   ;;  %s143_s0 = inlined_call_operand.hbm [shape: f32[2,256], index: 0, kind: input, shape index: {}]   ;;  %s144_s1 = inlined_call_operand.vmem [shape: s32[2,2], index: 1, kind: input, shape index: {}]   ;;  %s145_s2 = inlined_call_operand.<no memory space> [shape: f32[1,1], index: 2, kind: input, shape index: {}]   ;;  %s146_s3 = inlined_call_operand.vmem [shape: f32[2,1], index: 3, kind: output, shape index: {}]  }
   0x1   :  { %s16_s13 = sshll.u32 %s99_s12, 4  ;;  %s75_s16 = scalar_lea.hbm %s143_s0, 64  ;;  %s17_s13 = int_to_ptr.vmem [resolvable:$true] %s16_s13 }
   0x2   :  { %p76_p0 = scmp.ne.s32.totalorder %s143_s0, %s75_s16  ;;  %p79_p1 = scmp.lt.u32.totalorder %s75_s16, %s143_s0 }
   0x4   :  { %p81_p2 = pnand %p79_p1, %p76_p0 }
   0x6   :  { %84 = shalt.err (!%p81_p2)
}
   0x7   :  { %s85_s21 = scalar_lea.vmem %s17_s13, 64  ;;  %p90_p4 = scmp.lt.s32.totalorder %s17_s13, %s17_s13 }
   0x8   :  { %p86_p3 = scmp.ne.s32.totalorder %s17_s13, %s85_s21  ;;  %p91_p5 = scmp.lt.s32.totalorder %s85_s21, %s85_s21 }
   0xa   :  { %p92_p6 = por %p91_p5, %p90_p4 }
   0xc   :  { %p93_p7 = pnand %p92_p6, %p86_p3 }
   0xe   :  { %96 = shalt.err (!%p93_p7)
}
   0xf   :  { %19 = dma.hbm_to_vmem [thread:$0]  %s143_s0, 64, %s17_s13, [#allocation4]  }
  0x10   :  { %97 = dma.done.wait [#allocation4], 64  }
  0x11   :  { %98 = vsyncadd [#allocation4], 4294967232  ;;  %v100_v0 = vmov 1   ;;  %v27_v1 = vld [vmem:[%s144_s1] sm:$0x3]  ;;  %s101_s26 = smov 1   ;;  %v32_v5 = vlaneseq  ;;  %v61_v16 = vstv %s145_s2 }
  0x12   :  { %74 = vset.pattern.permute.xlu0 %v100_v0  ;;  %v28_v2 = vmul.u32 16, %v27_v1  ;;  %v70_v7 = vld.sshfl [vmem:[#allocation3] sm:$0x33 pattern:$0x76325410]  ;;  %vm54_vm0 = vcmask 1041408  }
  0x13   :  { %29 = vrot.lane.b32.xlu0 %v27_v1, %s101_s26  ;;  %v33_v6 = vand.u32 127, %v32_v5  ;;  %v49_v9 = vcombine.high %v70_v7, %v70_v7  ;;  %vm63_vm3 = vcmask 1024  }
  0x15   :  { %v34_v8 = vadd.s32 128, %v33_v6 }
  0x85   :  { %v30_v3 = vpop.permute.xlu0 %29 }
  0x86   :  { %v31_v4 = vadd.s32 %v30_v3, %v28_v2 }
  0x88   :  { %36 = vperm.xlu0 %74, %v31_v4  }
 0x107   :  { %v37_v10 = vpop.permute.xlu0 %36 }
 0x108   :  { %vm38_vm1 = vcmp.eq.s32.totalorder %v33_v6, %v37_v10  ;;  %vm39_vm2 = vcmp.eq.s32.totalorder %v34_v8, %v37_v10 }
 0x109   :  { %v52_v11 = vsel %vm38_vm1, %v70_v7, 0.0  ;;  %v53_v12 = vsel %vm39_vm2, %v49_v9, 0.0 }
 0x10a   :  { %v55_v13 = vsel %vm54_vm0, %v52_v11, 0.0  ;;  %v56_v14 = vsel %vm54_vm0, %v53_v12, 0.0 }
 0x10b   :  { %v57_v15 = vadd.f32 %v56_v14, %v55_v13 }
 0x10d   :  { %58 = vadd.xlane.f32.xlu1 %v57_v15 }
 0x19a   :  { %v59_v17 = vpop.xlane.xlu1 %58 }
 0x19b   :  { %v62_v18 = vmul.f32 %v61_v16, %v59_v17 }
 0x19d   :  { %64 = vst.msk [vmem:[%s146_s3] sm:$0x3] %vm63_vm3, %v62_v18 }
 0x19e   :  { %69 = vsyncpa [#allocation4], 1 }

</bundles_post_ra>
